<compile_context>
chip_gen: v5e
topology: v5e:2x2
jax: 0.10.0
libtpu: 0.0.40
codegen_flags: <defaults>
</compile_context>

<pallas_src>
import functools

import numpy as np

import jax
import jax.numpy as jnp
from jax import lax
from jax.experimental import pallas as pl
from jax.experimental.pallas import tpu as pltpu

ACTION_SIZE = 3
CONTEXT_SIZE = 3
HIDDEN = 2 * ACTION_SIZE
NEG_SLOPE = 0.1
EPS = 1e-5
MAX_DEPTH = 100
MAX_TILE_B = 256       # lane width per batch tile (2 vregs per value; no spills)
CHECK_EVERY = 4        # latent steps per convergence check (divides MAX_DEPTH)


def _cdiv(a, b):
    return -(-a // b)


def _round_up(a, b):
    return _cdiv(a, b) * b


def _pick_tile_b(batch):
    # Cap the tile so batches with enough work produce >= 2 grid tiles (keeps both
    # v7x TensorCores busy via dimension_semantics=("parallel",)); never below one
    # full lane vector, never above MAX_TILE_B (vreg-pressure budget).
    half = _cdiv(max(batch, 1), 2)
    return int(min(MAX_TILE_B, max(128, _round_up(half, 128))))


def _make_kernel(action_size, num_players, context_size, tile_b, batch_size,
                 eps, max_depth, check_every, training):
    assert action_size == 3, "simplex projection specialized for action_size == 3"
    A, P, C, TB = action_size, num_players, context_size, tile_b
    H = A * P
    eps_sq = float(eps) * float(eps)

    def kernel(d_ref, w1_ref, b1_ref, w2_ref, b2_ref, out_ref):
        d = d_ref[...]                    # (C, TB)
        w1 = w1_ref[...]                  # (H, C)  player-interleaved rows
        w2n = -w2_ref[...]                # (H, H)  player-interleaved rows & cols

        # ---- data_space_forward: Qd = leaky_relu(W1 @ d + b1), VPU only ----
        acc1 = jnp.broadcast_to(b1_ref[...], (H, TB))
        for c in range(C):
            acc1 = acc1 + jnp.broadcast_to(w1[:, c:c + 1], (H, TB)) * d[c:c + 1, :]
        qd = jnp.where(acc1 >= 0.0, acc1, NEG_SLOPE * acc1)

        # ---- loop-invariant hoists ----
        w2neg_cols = [jnp.broadcast_to(w2n[:, k:k + 1], (H, TB)) for k in range(H)]
        # c0 = -(W2 @ Qd + b2)  (algebraic fold of the latent step)
        c0 = jnp.broadcast_to(-b2_ref[...], (H, TB))
        for k in range(H):
            c0 = c0 + w2neg_cols[k] * qd[k:k + 1, :]

        # Lane-validity mask: padded lanes excluded from the convergence check so
        # it matches torch's max over the real batch.
        col = lax.broadcasted_iota(jnp.int32, (1, TB), 1)
        valid = (pl.program_id(0) * TB + col) < batch_size

        def project_simplex(pre):
            # TODO(synk): project_simplex source was not provided; this is the
            # standard sort-based Euclidean projection onto the probability
            # simplex, specialized to 3 actions (branch-free 3-sort), applied
            # independently per player.  Rows are player-interleaved, so each
            # action slab pre[a*P:(a+1)*P] is one action for every player and the
            # whole projection is element-wise on (P, TB) values.
            s0 = pre[0 * P:1 * P, :]
            s1 = pre[1 * P:2 * P, :]
            s2 = pre[2 * P:3 * P, :]
            m1 = jnp.maximum(jnp.maximum(s0, s1), s2)       # largest
            m3 = jnp.minimum(jnp.minimum(s0, s1), s2)       # smallest
            sum3 = s0 + s1 + s2
            m2 = sum3 - m1 - m3                             # middle
            sum2 = m1 + m2
            use3 = (3.0 * m3 - sum3 + 1.0) > 0.0
            use2 = (2.0 * m2 - sum2 + 1.0) > 0.0
            tau = jnp.where(use3, (1.0 - sum3) * (1.0 / 3.0),
                            jnp.where(use2, (1.0 - sum2) * 0.5, 1.0 - m1))
            return (jnp.maximum(s0 + tau, 0.0),
                    jnp.maximum(s1 + tau, 0.0),
                    jnp.maximum(s2 + tau, 0.0))

        def latent_step(z):
            # u - (W2(u+Qd) + b2 + u) == (-W2) @ u + c0
            acc = c0
            for a_in in range(A):
                slab = z[a_in]
                for p_in in range(P):
                    k = a_in * P + p_in
                    acc = acc + w2neg_cols[k] * slab[p_in:p_in + 1, :]
            return project_simplex(acc)

        def cond_fn(carry):
            _, depth, res_sq = carry
            return jnp.logical_and(res_sq > eps_sq, depth < max_depth)

        def body_fn(carry):
            z, depth, _ = carry
            # check_every latent steps per chunk (statically unrolled); residual +
            # lane-max (the only vector->scalar sync) once per chunk.  May run up
            # to check_every-1 harmless extra steps past convergence.
            for _ in range(check_every - 1):
                z = latent_step(z)
            z_prev = z
            z = latent_step(z)
            dsq = ((z[0] - z_prev[0]) ** 2 + (z[1] - z_prev[1]) ** 2 +
                   (z[2] - z_prev[2]) ** 2)                     # (P, TB)
            res = jnp.sum(dsq, axis=0, keepdims=True)           # (1, TB)
            res = jnp.where(valid, res, 0.0)
            return z, depth + check_every, jnp.max(res)

        z0 = jnp.full((P, TB), 1.0 / 3.0, dtype=jnp.float32)
        init = ((z0, z0, z0), jnp.asarray(0, jnp.int32),
                jnp.asarray(jnp.inf, jnp.float32))
        z, _, _ = lax.while_loop(cond_fn, body_fn, init)
        # TODO(synk): depth_warning print at max_depth not reproduced in-kernel.

        if training:
            # attach_gradients: one extra latent step (projection included).
            z = latent_step(z)
        # map_latent_to_inference is the identity.
        out_ref[...] = jnp.concatenate([z[0], z[1], z[2]], axis=0)

    return kernel


@functools.partial(jax.jit,
                   static_argnames=("eps", "max_depth", "check_every", "training"))
def nfpn_rps_forward(d, w1, b1, w2, b2, *, eps=EPS, max_depth=MAX_DEPTH,
                     check_every=CHECK_EVERY, training=False):
    """d: (B, context); w1: (H, context); b1: (H,); w2: (H, H); b2: (H,)."""
    d = d.astype(jnp.float32)
    B, C = d.shape
    H = w1.shape[0]
    A = ACTION_SIZE
    P = H // A
    assert P * A == H, "hidden dim must be action_size * num_players"

    tile_b = _pick_tile_b(B)
    n_tiles = max(_cdiv(max(B, 1), tile_b), 1)
    bp = n_tiles * tile_b

    # Player-interleaved row order used inside the kernel:
    #   interleaved row k  <->  natural row (k % P) * A + (k // P)
    perm = np.array([(k % P) * A + (k // P) for k in range(H)], dtype=np.int32)
    inv_perm = np.argsort(perm)

    # Batch on lanes (transpose) + pad to the tile; permute tiny weights once.
    d_t = jnp.zeros((C, bp), jnp.float32).at[:, :B].set(d.T)
    w1p = w1.astype(jnp.float32)[perm, :]
    b1p = b1.astype(jnp.float32)[perm].reshape(H, 1)
    w2p = w2.astype(jnp.float32)[perm, :][:, perm]
    b2p = b2.astype(jnp.float32)[perm].reshape(H, 1)

    kernel = _make_kernel(A, P, C, tile_b, B, eps, max_depth, check_every, training)

    out_t = pl.pallas_call(
        kernel,
        out_shape=jax.ShapeDtypeStruct((H, bp), jnp.float32),
        grid_spec=pltpu.PrefetchScalarGridSpec(
            num_scalar_prefetch=0,
            grid=(n_tiles,),
            in_specs=[
                pl.BlockSpec((C, tile_b), lambda i: (0, i)),   # d (batch-tiled)
                pl.BlockSpec((H, C), lambda i: (0, 0)),        # W1 (resident)
                pl.BlockSpec((H, 1), lambda i: (0, 0)),        # b1
                pl.BlockSpec((H, H), lambda i: (0, 0)),        # W2
                pl.BlockSpec((H, 1), lambda i: (0, 0)),        # b2
            ],
            out_specs=pl.BlockSpec((H, tile_b), lambda i: (0, i)),
        ),
        compiler_params=pltpu.CompilerParams(
            dimension_semantics=("parallel",)),
    )(d_t, w1p, b1p, w2p, b2p)

    # Back to the natural row order and (B, H) layout.
    return out_t[inv_perm, :][:, :B].T


# ----------------------- pure NumPy reference (torch semantics) -----------------------
def _reference_forward(d, w1, b1, w2, b2, eps=EPS, max_depth=MAX_DEPTH, training=False):
    d = np.asarray(d, np.float64)
    w1 = np.asarray(w1, np.float64); b1 = np.asarray(b1, np.float64)
    w2 = np.asarray(w2, np.float64); b2 = np.asarray(b2, np.float64)
    A = ACTION_SIZE
    H = w1.shape[0]

    def project_simplex(y):
        out = np.empty_like(y)
        for p in range(H // A):
            blk = y[:, p * A:(p + 1) * A]
            s = -np.sort(-blk, axis=1)
            css = np.cumsum(s, axis=1)
            j = np.arange(1, A + 1)
            rho = np.sum(s + (1.0 - css) / j > 0.0, axis=1)
            tau = (1.0 - css[np.arange(y.shape[0]), rho - 1]) / rho
            out[:, p * A:(p + 1) * A] = np.maximum(blk + tau[:, None], 0.0)
        return out

    def latent(u, qd):
        fxd = (u + qd) @ w2.T + b2 + u
        return project_simplex(u - fxd)

    qd = d @ w1.T + b1
    qd = np.where(qd >= 0, qd, NEG_SLOPE * qd)
    u = np.full((d.shape[0], H), 1.0 / 3.0)
    depth = 0
    while depth < max_depth:
        u_prev = u
        u = latent(u_prev, qd)
        depth += 1
        if np.max(np.linalg.norm(u - u_prev, axis=1)) <= eps:
            break
    if training:
        u = latent(u, qd)
    return u


if __name__ == "__main__":
    key = jax.random.PRNGKey(0)
    k_w1, k_b1, k_w2, k_b2, k_d1, k_d2 = jax.random.split(key, 6)

    # torch.nn.Linear-style init: U(-1/sqrt(fan_in), 1/sqrt(fan_in)); torch layout.
    bound1 = 1.0 / (CONTEXT_SIZE ** 0.5)
    w1 = jax.random.uniform(k_w1, (HIDDEN, CONTEXT_SIZE), jnp.float32, -bound1, bound1)
    b1 = jax.random.uniform(k_b1, (HIDDEN,), jnp.float32, -bound1, bound1)
    bound2 = 1.0 / (HIDDEN ** 0.5)
    # fc_2 scaled down so the PGD-type operator is contractive (as for a trained
    # N-FPN); guarantees convergence well before max_depth and a tight ref check.
    w2 = 0.3 * jax.random.uniform(k_w2, (HIDDEN, HIDDEN), jnp.float32, -bound2, bound2)
    b2 = jax.random.uniform(k_b2, (HIDDEN,), jnp.float32, -bound2, bound2)

    # --- small batch (single tile), eval mode, checked against the reference ---
    d_small = jax.random.normal(k_d1, (2, CONTEXT_SIZE), jnp.float32)
    out = jax.block_until_ready(nfpn_rps_forward(d_small, w1, b1, w2, b2))
    assert out.shape == (2, HIDDEN) and out.dtype == jnp.float32
    ref = _reference_forward(d_small, w1, b1, w2, b2)
    err = np.max(np.abs(np.asarray(out) - ref))
    assert err < 1e-3, f"mismatch vs reference: max abs err {err}"

    # --- larger batch (multiple grid tiles + padded lanes), simplex sanity ---
    d_big = jax.random.normal(k_d2, (300, CONTEXT_SIZE), jnp.float32)
    out_big = jax.block_until_ready(nfpn_rps_forward(d_big, w1, b1, w2, b2))
    assert out_big.shape == (300, HIDDEN)
    ob = np.asarray(out_big)
    sums = ob.reshape(300, HIDDEN // ACTION_SIZE, ACTION_SIZE).sum(-1)
    assert np.all(ob >= -1e-5) and np.allclose(sums, 1.0, atol=1e-4)

    # --- training mode (one extra attach-gradients latent step) ---
    out_tr = jax.block_until_ready(
        nfpn_rps_forward(d_small, w1, b1, w2, b2, training=True))
    ref_tr = _reference_forward(d_small, w1, b1, w2, b2, training=True)
    assert np.max(np.abs(np.asarray(out_tr) - ref_tr)) < 1e-3

    print("KERNEL_OK")
</pallas_src>

<mosaic_0001>
module attributes {stable_mosaic.version = 11 : i64} {
  func.func @kernel(%arg0: i32, %arg1: memref<3x128xf32, #tpu.memory_space<vmem>>, %arg2: memref<6x3xf32, #tpu.memory_space<vmem>>, %arg3: memref<6x1xf32, #tpu.memory_space<vmem>>, %arg4: memref<6x6xf32, #tpu.memory_space<vmem>>, %arg5: memref<6x1xf32, #tpu.memory_space<vmem>>, %arg6: memref<6x128xf32, #tpu.memory_space<vmem>>) attributes {dimension_semantics = [#tpu.dimension_semantics<parallel>], iteration_bounds = array<i64: 1>, scalar_prefetch = 0 : i64, scratch_operands = 0 : i64, tpu.core_type = #tpu.core_type<tc>, window_params = [{transform_indices = @transform_0, window_bounds = array<i64: 3, 128>}, {pipeline_mode = #tpu.pipeline_mode<synchronous>, transform_indices = @transform_1, window_bounds = array<i64: 6, 3>}, {pipeline_mode = #tpu.pipeline_mode<synchronous>, transform_indices = @transform_2, window_bounds = array<i64: 6, 1>}, {pipeline_mode = #tpu.pipeline_mode<synchronous>, transform_indices = @transform_3, window_bounds = array<i64: 6, 6>}, {pipeline_mode = #tpu.pipeline_mode<synchronous>, transform_indices = @transform_4, window_bounds = array<i64: 6, 1>}, {transform_indices = @transform_5, window_bounds = array<i64: 6, 128>}]} {
    %c0 = arith.constant 0 : index
    %c0_0 = arith.constant 0 : index
    %0 = vector.load %arg1[%c0, %c0_0] : memref<3x128xf32, #tpu.memory_space<vmem>>, vector<3x128xf32>
    %c0_1 = arith.constant 0 : index
    %c0_2 = arith.constant 0 : index
    %1 = vector.load %arg2[%c0_1, %c0_2] : memref<6x3xf32, #tpu.memory_space<vmem>>, vector<6x3xf32>
    %c0_3 = arith.constant 0 : index
    %c0_4 = arith.constant 0 : index
    %2 = vector.load %arg4[%c0_3, %c0_4] : memref<6x6xf32, #tpu.memory_space<vmem>>, vector<6x6xf32>
    %cst = arith.constant 0.000000e+00 : f32
    %3 = vector.broadcast %cst : f32 to vector<6x6xf32>
    %4 = arith.subf %3, %2 : vector<6x6xf32>
    %c0_5 = arith.constant 0 : index
    %c0_6 = arith.constant 0 : index
    %5 = vector.load %arg3[%c0_5, %c0_6] : memref<6x1xf32, #tpu.memory_space<vmem>>, vector<6x1xf32>
    %6 = vector.shape_cast %5 : vector<6x1xf32> to vector<6x1xf32>
    %7 = vector.broadcast %6 : vector<6x1xf32> to vector<6x128xf32>
    %8 = vector.extract_strided_slice %1 {offsets = [0, 0], sizes = [6, 1], strides = [1, 1]} : vector<6x3xf32> to vector<6x1xf32>
    %9 = vector.shape_cast %8 : vector<6x1xf32> to vector<6x1xf32>
    %10 = vector.broadcast %9 : vector<6x1xf32> to vector<6x128xf32>
    %11 = vector.extract_strided_slice %0 {offsets = [0, 0], sizes = [1, 128], strides = [1, 1]} : vector<3x128xf32> to vector<1x128xf32>
    %12 = vector.broadcast %11 : vector<1x128xf32> to vector<6x128xf32>
    %13 = arith.mulf %10, %12 : vector<6x128xf32>
    %14 = arith.addf %7, %13 : vector<6x128xf32>
    %15 = vector.extract_strided_slice %1 {offsets = [0, 1], sizes = [6, 1], strides = [1, 1]} : vector<6x3xf32> to vector<6x1xf32>
    %16 = vector.shape_cast %15 : vector<6x1xf32> to vector<6x1xf32>
    %17 = vector.broadcast %16 : vector<6x1xf32> to vector<6x128xf32>
    %18 = vector.extract_strided_slice %0 {offsets = [1, 0], sizes = [1, 128], strides = [1, 1]} : vector<3x128xf32> to vector<1x128xf32>
    %19 = vector.broadcast %18 : vector<1x128xf32> to vector<6x128xf32>
    %20 = arith.mulf %17, %19 : vector<6x128xf32>
    %21 = arith.addf %14, %20 : vector<6x128xf32>
    %22 = vector.extract_strided_slice %1 {offsets = [0, 2], sizes = [6, 1], strides = [1, 1]} : vector<6x3xf32> to vector<6x1xf32>
    %23 = vector.shape_cast %22 : vector<6x1xf32> to vector<6x1xf32>
    %24 = vector.broadcast %23 : vector<6x1xf32> to vector<6x128xf32>
    %25 = vector.extract_strided_slice %0 {offsets = [2, 0], sizes = [1, 128], strides = [1, 1]} : vector<3x128xf32> to vector<1x128xf32>
    %26 = vector.broadcast %25 : vector<1x128xf32> to vector<6x128xf32>
    %27 = arith.mulf %24, %26 : vector<6x128xf32>
    %28 = arith.addf %21, %27 : vector<6x128xf32>
    %cst_7 = arith.constant 0.000000e+00 : f32
    %29 = vector.broadcast %cst_7 : f32 to vector<6x128xf32>
    %30 = arith.cmpf oge, %28, %29 : vector<6x128xf32>
    %cst_8 = arith.constant 1.000000e-01 : f32
    %31 = vector.broadcast %cst_8 : f32 to vector<6x128xf32>
    %32 = arith.mulf %31, %28 : vector<6x128xf32>
    %33 = arith.select %30, %28, %32 : vector<6x128xi1>, vector<6x128xf32>
    %34 = vector.extract_strided_slice %4 {offsets = [0, 0], sizes = [6, 1], strides = [1, 1]} : vector<6x6xf32> to vector<6x1xf32>
    %35 = vector.shape_cast %34 : vector<6x1xf32> to vector<6x1xf32>
    %36 = vector.broadcast %35 : vector<6x1xf32> to vector<6x128xf32>
    %37 = vector.extract_strided_slice %4 {offsets = [0, 1], sizes = [6, 1], strides = [1, 1]} : vector<6x6xf32> to vector<6x1xf32>
    %38 = vector.shape_cast %37 : vector<6x1xf32> to vector<6x1xf32>
    %39 = vector.broadcast %38 : vector<6x1xf32> to vector<6x128xf32>
    %40 = vector.extract_strided_slice %4 {offsets = [0, 2], sizes = [6, 1], strides = [1, 1]} : vector<6x6xf32> to vector<6x1xf32>
    %41 = vector.shape_cast %40 : vector<6x1xf32> to vector<6x1xf32>
    %42 = vector.broadcast %41 : vector<6x1xf32> to vector<6x128xf32>
    %43 = vector.extract_strided_slice %4 {offsets = [0, 3], sizes = [6, 1], strides = [1, 1]} : vector<6x6xf32> to vector<6x1xf32>
    %44 = vector.shape_cast %43 : vector<6x1xf32> to vector<6x1xf32>
    %45 = vector.broadcast %44 : vector<6x1xf32> to vector<6x128xf32>
    %46 = vector.extract_strided_slice %4 {offsets = [0, 4], sizes = [6, 1], strides = [1, 1]} : vector<6x6xf32> to vector<6x1xf32>
    %47 = vector.shape_cast %46 : vector<6x1xf32> to vector<6x1xf32>
    %48 = vector.broadcast %47 : vector<6x1xf32> to vector<6x128xf32>
    %49 = vector.extract_strided_slice %4 {offsets = [0, 5], sizes = [6, 1], strides = [1, 1]} : vector<6x6xf32> to vector<6x1xf32>
    %50 = vector.shape_cast %49 : vector<6x1xf32> to vector<6x1xf32>
    %51 = vector.broadcast %50 : vector<6x1xf32> to vector<6x128xf32>
    %c0_9 = arith.constant 0 : index
    %c0_10 = arith.constant 0 : index
    %52 = vector.load %arg5[%c0_9, %c0_10] : memref<6x1xf32, #tpu.memory_space<vmem>>, vector<6x1xf32>
    %cst_11 = arith.constant 0.000000e+00 : f32
    %53 = vector.broadcast %cst_11 : f32 to vector<6x1xf32>
    %54 = arith.subf %53, %52 : vector<6x1xf32>
    %55 = vector.shape_cast %54 : vector<6x1xf32> to vector<6x1xf32>
    %56 = vector.broadcast %55 : vector<6x1xf32> to vector<6x128xf32>
    %57 = vector.extract_strided_slice %33 {offsets = [0, 0], sizes = [1, 128], strides = [1, 1]} : vector<6x128xf32> to vector<1x128xf32>
    %58 = vector.broadcast %57 : vector<1x128xf32> to vector<6x128xf32>
    %59 = arith.mulf %36, %58 : vector<6x128xf32>
    %60 = arith.addf %56, %59 : vector<6x128xf32>
    %61 = vector.extract_strided_slice %33 {offsets = [1, 0], sizes = [1, 128], strides = [1, 1]} : vector<6x128xf32> to vector<1x128xf32>
    %62 = vector.broadcast %61 : vector<1x128xf32> to vector<6x128xf32>
    %63 = arith.mulf %39, %62 : vector<6x128xf32>
    %64 = arith.addf %60, %63 : vector<6x128xf32>
    %65 = vector.extract_strided_slice %33 {offsets = [2, 0], sizes = [1, 128], strides = [1, 1]} : vector<6x128xf32> to vector<1x128xf32>
    %66 = vector.broadcast %65 : vector<1x128xf32> to vector<6x128xf32>
    %67 = arith.mulf %42, %66 : vector<6x128xf32>
    %68 = arith.addf %64, %67 : vector<6x128xf32>
    %69 = vector.extract_strided_slice %33 {offsets = [3, 0], sizes = [1, 128], strides = [1, 1]} : vector<6x128xf32> to vector<1x128xf32>
    %70 = vector.broadcast %69 : vector<1x128xf32> to vector<6x128xf32>
    %71 = arith.mulf %45, %70 : vector<6x128xf32>
    %72 = arith.addf %68, %71 : vector<6x128xf32>
    %73 = vector.extract_strided_slice %33 {offsets = [4, 0], sizes = [1, 128], strides = [1, 1]} : vector<6x128xf32> to vector<1x128xf32>
    %74 = vector.broadcast %73 : vector<1x128xf32> to vector<6x128xf32>
    %75 = arith.mulf %48, %74 : vector<6x128xf32>
    %76 = arith.addf %72, %75 : vector<6x128xf32>
    %77 = vector.extract_strided_slice %33 {offsets = [5, 0], sizes = [1, 128], strides = [1, 1]} : vector<6x128xf32> to vector<1x128xf32>
    %78 = vector.broadcast %77 : vector<1x128xf32> to vector<6x128xf32>
    %79 = arith.mulf %51, %78 : vector<6x128xf32>
    %80 = arith.addf %76, %79 : vector<6x128xf32>
    %81 = tpu.iota {dimensions = array<i32: 1>} : vector<1x128xi32>
    %c128_i32 = arith.constant 128 : i32
    %82 = arith.muli %arg0, %c128_i32 : i32
    %83 = vector.broadcast %82 : i32 to vector<1x128xi32>
    %84 = arith.addi %83, %81 : vector<1x128xi32>
    %c2_i32 = arith.constant 2 : i32
    %85 = vector.broadcast %c2_i32 : i32 to vector<1x128xi32>
    %86 = arith.cmpi slt, %84, %85 : vector<1x128xi32>
    %cst_12 = arith.constant 0.333333343 : f32
    %87 = vector.broadcast %cst_12 : f32 to vector<2x128xf32>
    %c0_i32 = arith.constant 0 : i32
    %cst_13 = arith.constant 0x7F800000 : f32
    %88:5 = scf.while (%arg7 = %87, %arg8 = %87, %arg9 = %87, %arg10 = %c0_i32, %arg11 = %cst_13) : (vector<2x128xf32>, vector<2x128xf32>, vector<2x128xf32>, i32, f32) -> (vector<2x128xf32>, vector<2x128xf32>, vector<2x128xf32>, i32, f32) {
      %cst_16 = arith.constant 1.000000e-10 : f32
      %91 = arith.cmpf ogt, %arg11, %cst_16 : f32
      %c100_i32 = arith.constant 100 : i32
      %92 = arith.cmpi slt, %arg10, %c100_i32 : i32
      %93 = arith.andi %91, %92 : i1
      scf.condition(%93) %arg7, %arg8, %arg9, %arg10, %arg11 : vector<2x128xf32>, vector<2x128xf32>, vector<2x128xf32>, i32, f32
    } do {
    ^bb0(%arg7: vector<2x128xf32>, %arg8: vector<2x128xf32>, %arg9: vector<2x128xf32>, %arg10: i32, %arg11: f32):
      %91 = vector.extract_strided_slice %arg7 {offsets = [0, 0], sizes = [1, 128], strides = [1, 1]} : vector<2x128xf32> to vector<1x128xf32>
      %92 = vector.broadcast %91 : vector<1x128xf32> to vector<6x128xf32>
      %93 = arith.mulf %36, %92 : vector<6x128xf32>
      %94 = arith.addf %80, %93 : vector<6x128xf32>
      %95 = vector.extract_strided_slice %arg7 {offsets = [1, 0], sizes = [1, 128], strides = [1, 1]} : vector<2x128xf32> to vector<1x128xf32>
      %96 = vector.broadcast %95 : vector<1x128xf32> to vector<6x128xf32>
      %97 = arith.mulf %39, %96 : vector<6x128xf32>
      %98 = arith.addf %94, %97 : vector<6x128xf32>
      %99 = vector.extract_strided_slice %arg8 {offsets = [0, 0], sizes = [1, 128], strides = [1, 1]} : vector<2x128xf32> to vector<1x128xf32>
      %100 = vector.broadcast %99 : vector<1x128xf32> to vector<6x128xf32>
      %101 = arith.mulf %42, %100 : vector<6x128xf32>
      %102 = arith.addf %98, %101 : vector<6x128xf32>
      %103 = vector.extract_strided_slice %arg8 {offsets = [1, 0], sizes = [1, 128], strides = [1, 1]} : vector<2x128xf32> to vector<1x128xf32>
      %104 = vector.broadcast %103 : vector<1x128xf32> to vector<6x128xf32>
      %105 = arith.mulf %45, %104 : vector<6x128xf32>
      %106 = arith.addf %102, %105 : vector<6x128xf32>
      %107 = vector.extract_strided_slice %arg9 {offsets = [0, 0], sizes = [1, 128], strides = [1, 1]} : vector<2x128xf32> to vector<1x128xf32>
      %108 = vector.broadcast %107 : vector<1x128xf32> to vector<6x128xf32>
      %109 = arith.mulf %48, %108 : vector<6x128xf32>
      %110 = arith.addf %106, %109 : vector<6x128xf32>
      %111 = vector.extract_strided_slice %arg9 {offsets = [1, 0], sizes = [1, 128], strides = [1, 1]} : vector<2x128xf32> to vector<1x128xf32>
      %112 = vector.broadcast %111 : vector<1x128xf32> to vector<6x128xf32>
      %113 = arith.mulf %51, %112 : vector<6x128xf32>
      %114 = arith.addf %110, %113 : vector<6x128xf32>
      %115 = vector.extract_strided_slice %114 {offsets = [0, 0], sizes = [2, 128], strides = [1, 1]} : vector<6x128xf32> to vector<2x128xf32>
      %116 = vector.extract_strided_slice %114 {offsets = [2, 0], sizes = [2, 128], strides = [1, 1]} : vector<6x128xf32> to vector<2x128xf32>
      %117 = vector.extract_strided_slice %114 {offsets = [4, 0], sizes = [2, 128], strides = [1, 1]} : vector<6x128xf32> to vector<2x128xf32>
      %118 = arith.maximumf %115, %116 : vector<2x128xf32>
      %119 = arith.maximumf %118, %117 : vector<2x128xf32>
      %120 = arith.minimumf %115, %116 : vector<2x128xf32>
      %121 = arith.minimumf %120, %117 : vector<2x128xf32>
      %122 = arith.addf %115, %116 : vector<2x128xf32>
      %123 = arith.addf %122, %117 : vector<2x128xf32>
      %124 = arith.subf %123, %119 : vector<2x128xf32>
      %125 = arith.subf %124, %121 : vector<2x128xf32>
      %126 = arith.addf %119, %125 : vector<2x128xf32>
      %cst_16 = arith.constant 3.000000e+00 : f32
      %127 = vector.broadcast %cst_16 : f32 to vector<2x128xf32>
      %128 = arith.mulf %127, %121 : vector<2x128xf32>
      %129 = arith.subf %128, %123 : vector<2x128xf32>
      %cst_17 = arith.constant 1.000000e+00 : f32
      %130 = vector.broadcast %cst_17 : f32 to vector<2x128xf32>
      %131 = arith.addf %129, %130 : vector<2x128xf32>
      %cst_18 = arith.constant 0.000000e+00 : f32
      %132 = vector.broadcast %cst_18 : f32 to vector<2x128xf32>
      %133 = arith.cmpf ogt, %131, %132 : vector<2x128xf32>
      %cst_19 = arith.constant 2.000000e+00 : f32
      %134 = vector.broadcast %cst_19 : f32 to vector<2x128xf32>
      %135 = arith.mulf %134, %125 : vector<2x128xf32>
      %136 = arith.subf %135, %126 : vector<2x128xf32>
      %cst_20 = arith.constant 1.000000e+00 : f32
      %137 = vector.broadcast %cst_20 : f32 to vector<2x128xf32>
      %138 = arith.addf %136, %137 : vector<2x128xf32>
      %cst_21 = arith.constant 0.000000e+00 : f32
      %139 = vector.broadcast %cst_21 : f32 to vector<2x128xf32>
      %140 = arith.cmpf ogt, %138, %139 : vector<2x128xf32>
      %cst_22 = arith.constant 1.000000e+00 : f32
      %141 = vector.broadcast %cst_22 : f32 to vector<2x128xf32>
      %142 = arith.subf %141, %123 : vector<2x128xf32>
      %cst_23 = arith.constant 0.333333343 : f32
      %143 = vector.broadcast %cst_23 : f32 to vector<2x128xf32>
      %144 = arith.mulf %142, %143 : vector<2x128xf32>
      %cst_24 = arith.constant 1.000000e+00 : f32
      %145 = vector.broadcast %cst_24 : f32 to vector<2x128xf32>
      %146 = arith.subf %145, %126 : vector<2x128xf32>
      %cst_25 = arith.constant 5.000000e-01 : f32
      %147 = vector.broadcast %cst_25 : f32 to vector<2x128xf32>
      %148 = arith.mulf %146, %147 : vector<2x128xf32>
      %cst_26 = arith.constant 1.000000e+00 : f32
      %149 = vector.broadcast %cst_26 : f32 to vector<2x128xf32>
      %150 = arith.subf %149, %119 : vector<2x128xf32>
      %151 = arith.select %140, %148, %150 : vector<2x128xi1>, vector<2x128xf32>
      %152 = arith.select %133, %144, %151 : vector<2x128xi1>, vector<2x128xf32>
      %153 = arith.addf %115, %152 : vector<2x128xf32>
      %cst_27 = arith.constant 0.000000e+00 : f32
      %154 = vector.broadcast %cst_27 : f32 to vector<2x128xf32>
      %155 = arith.maximumf %153, %154 : vector<2x128xf32>
      %156 = arith.addf %116, %152 : vector<2x128xf32>
      %cst_28 = arith.constant 0.000000e+00 : f32
      %157 = vector.broadcast %cst_28 : f32 to vector<2x128xf32>
      %158 = arith.maximumf %156, %157 : vector<2x128xf32>
      %159 = arith.addf %117, %152 : vector<2x128xf32>
      %cst_29 = arith.constant 0.000000e+00 : f32
      %160 = vector.broadcast %cst_29 : f32 to vector<2x128xf32>
      %161 = arith.maximumf %159, %160 : vector<2x128xf32>
      %162 = vector.extract_strided_slice %155 {offsets = [0, 0], sizes = [1, 128], strides = [1, 1]} : vector<2x128xf32> to vector<1x128xf32>
      %163 = vector.broadcast %162 : vector<1x128xf32> to vector<6x128xf32>
      %164 = arith.mulf %36, %163 : vector<6x128xf32>
      %165 = arith.addf %80, %164 : vector<6x128xf32>
      %166 = vector.extract_strided_slice %155 {offsets = [1, 0], sizes = [1, 128], strides = [1, 1]} : vector<2x128xf32> to vector<1x128xf32>
      %167 = vector.broadcast %166 : vector<1x128xf32> to vector<6x128xf32>
      %168 = arith.mulf %39, %167 : vector<6x128xf32>
      %169 = arith.addf %165, %168 : vector<6x128xf32>
      %170 = vector.extract_strided_slice %158 {offsets = [0, 0], sizes = [1, 128], strides = [1, 1]} : vector<2x128xf32> to vector<1x128xf32>
      %171 = vector.broadcast %170 : vector<1x128xf32> to vector<6x128xf32>
      %172 = arith.mulf %42, %171 : vector<6x128xf32>
      %173 = arith.addf %169, %172 : vector<6x128xf32>
      %174 = vector.extract_strided_slice %158 {offsets = [1, 0], sizes = [1, 128], strides = [1, 1]} : vector<2x128xf32> to vector<1x128xf32>
      %175 = vector.broadcast %174 : vector<1x128xf32> to vector<6x128xf32>
      %176 = arith.mulf %45, %175 : vector<6x128xf32>
      %177 = arith.addf %173, %176 : vector<6x128xf32>
      %178 = vector.extract_strided_slice %161 {offsets = [0, 0], sizes = [1, 128], strides = [1, 1]} : vector<2x128xf32> to vector<1x128xf32>
      %179 = vector.broadcast %178 : vector<1x128xf32> to vector<6x128xf32>
      %180 = arith.mulf %48, %179 : vector<6x128xf32>
      %181 = arith.addf %177, %180 : vector<6x128xf32>
      %182 = vector.extract_strided_slice %161 {offsets = [1, 0], sizes = [1, 128], strides = [1, 1]} : vector<2x128xf32> to vector<1x128xf32>
      %183 = vector.broadcast %182 : vector<1x128xf32> to vector<6x128xf32>
      %184 = arith.mulf %51, %183 : vector<6x128xf32>
      %185 = arith.addf %181, %184 : vector<6x128xf32>
      %186 = vector.extract_strided_slice %185 {offsets = [0, 0], sizes = [2, 128], strides = [1, 1]} : vector<6x128xf32> to vector<2x128xf32>
      %187 = vector.extract_strided_slice %185 {offsets = [2, 0], sizes = [2, 128], strides = [1, 1]} : vector<6x128xf32> to vector<2x128xf32>
      %188 = vector.extract_strided_slice %185 {offsets = [4, 0], sizes = [2, 128], strides = [1, 1]} : vector<6x128xf32> to vector<2x128xf32>
      %189 = arith.maximumf %186, %187 : vector<2x128xf32>
      %190 = arith.maximumf %189, %188 : vector<2x128xf32>
      %191 = arith.minimumf %186, %187 : vector<2x128xf32>
      %192 = arith.minimumf %191, %188 : vector<2x128xf32>
      %193 = arith.addf %186, %187 : vector<2x128xf32>
      %194 = arith.addf %193, %188 : vector<2x128xf32>
      %195 = arith.subf %194, %190 : vector<2x128xf32>
      %196 = arith.subf %195, %192 : vector<2x128xf32>
      %197 = arith.addf %190, %196 : vector<2x128xf32>
      %cst_30 = arith.constant 3.000000e+00 : f32
      %198 = vector.broadcast %cst_30 : f32 to vector<2x128xf32>
      %199 = arith.mulf %198, %192 : vector<2x128xf32>
      %200 = arith.subf %199, %194 : vector<2x128xf32>
      %cst_31 = arith.constant 1.000000e+00 : f32
      %201 = vector.broadcast %cst_31 : f32 to vector<2x128xf32>
      %202 = arith.addf %200, %201 : vector<2x128xf32>
      %cst_32 = arith.constant 0.000000e+00 : f32
      %203 = vector.broadcast %cst_32 : f32 to vector<2x128xf32>
      %204 = arith.cmpf ogt, %202, %203 : vector<2x128xf32>
      %cst_33 = arith.constant 2.000000e+00 : f32
      %205 = vector.broadcast %cst_33 : f32 to vector<2x128xf32>
      %206 = arith.mulf %205, %196 : vector<2x128xf32>
      %207 = arith.subf %206, %197 : vector<2x128xf32>
      %cst_34 = arith.constant 1.000000e+00 : f32
      %208 = vector.broadcast %cst_34 : f32 to vector<2x128xf32>
      %209 = arith.addf %207, %208 : vector<2x128xf32>
      %cst_35 = arith.constant 0.000000e+00 : f32
      %210 = vector.broadcast %cst_35 : f32 to vector<2x128xf32>
      %211 = arith.cmpf ogt, %209, %210 : vector<2x128xf32>
      %cst_36 = arith.constant 1.000000e+00 : f32
      %212 = vector.broadcast %cst_36 : f32 to vector<2x128xf32>
      %213 = arith.subf %212, %194 : vector<2x128xf32>
      %cst_37 = arith.constant 0.333333343 : f32
      %214 = vector.broadcast %cst_37 : f32 to vector<2x128xf32>
      %215 = arith.mulf %213, %214 : vector<2x128xf32>
      %cst_38 = arith.constant 1.000000e+00 : f32
      %216 = vector.broadcast %cst_38 : f32 to vector<2x128xf32>
      %217 = arith.subf %216, %197 : vector<2x128xf32>
      %cst_39 = arith.constant 5.000000e-01 : f32
      %218 = vector.broadcast %cst_39 : f32 to vector<2x128xf32>
      %219 = arith.mulf %217, %218 : vector<2x128xf32>
      %cst_40 = arith.constant 1.000000e+00 : f32
      %220 = vector.broadcast %cst_40 : f32 to vector<2x128xf32>
      %221 = arith.subf %220, %190 : vector<2x128xf32>
      %222 = arith.select %211, %219, %221 : vector<2x128xi1>, vector<2x128xf32>
      %223 = arith.select %204, %215, %222 : vector<2x128xi1>, vector<2x128xf32>
      %224 = arith.addf %186, %223 : vector<2x128xf32>
      %cst_41 = arith.constant 0.000000e+00 : f32
      %225 = vector.broadcast %cst_41 : f32 to vector<2x128xf32>
      %226 = arith.maximumf %224, %225 : vector<2x128xf32>
      %227 = arith.addf %187, %223 : vector<2x128xf32>
      %cst_42 = arith.constant 0.000000e+00 : f32
      %228 = vector.broadcast %cst_42 : f32 to vector<2x128xf32>
      %229 = arith.maximumf %227, %228 : vector<2x128xf32>
      %230 = arith.addf %188, %223 : vector<2x128xf32>
      %cst_43 = arith.constant 0.000000e+00 : f32
      %231 = vector.broadcast %cst_43 : f32 to vector<2x128xf32>
      %232 = arith.maximumf %230, %231 : vector<2x128xf32>
      %233 = vector.extract_strided_slice %226 {offsets = [0, 0], sizes = [1, 128], strides = [1, 1]} : vector<2x128xf32> to vector<1x128xf32>
      %234 = vector.broadcast %233 : vector<1x128xf32> to vector<6x128xf32>
      %235 = arith.mulf %36, %234 : vector<6x128xf32>
      %236 = arith.addf %80, %235 : vector<6x128xf32>
      %237 = vector.extract_strided_slice %226 {offsets = [1, 0], sizes = [1, 128], strides = [1, 1]} : vector<2x128xf32> to vector<1x128xf32>
      %238 = vector.broadcast %237 : vector<1x128xf32> to vector<6x128xf32>
      %239 = arith.mulf %39, %238 : vector<6x128xf32>
      %240 = arith.addf %236, %239 : vector<6x128xf32>
      %241 = vector.extract_strided_slice %229 {offsets = [0, 0], sizes = [1, 128], strides = [1, 1]} : vector<2x128xf32> to vector<1x128xf32>
      %242 = vector.broadcast %241 : vector<1x128xf32> to vector<6x128xf32>
      %243 = arith.mulf %42, %242 : vector<6x128xf32>
      %244 = arith.addf %240, %243 : vector<6x128xf32>
      %245 = vector.extract_strided_slice %229 {offsets = [1, 0], sizes = [1, 128], strides = [1, 1]} : vector<2x128xf32> to vector<1x128xf32>
      %246 = vector.broadcast %245 : vector<1x128xf32> to vector<6x128xf32>
      %247 = arith.mulf %45, %246 : vector<6x128xf32>
      %248 = arith.addf %244, %247 : vector<6x128xf32>
      %249 = vector.extract_strided_slice %232 {offsets = [0, 0], sizes = [1, 128], strides = [1, 1]} : vector<2x128xf32> to vector<1x128xf32>
      %250 = vector.broadcast %249 : vector<1x128xf32> to vector<6x128xf32>
      %251 = arith.mulf %48, %250 : vector<6x128xf32>
      %252 = arith.addf %248, %251 : vector<6x128xf32>
      %253 = vector.extract_strided_slice %232 {offsets = [1, 0], sizes = [1, 128], strides = [1, 1]} : vector<2x128xf32> to vector<1x128xf32>
      %254 = vector.broadcast %253 : vector<1x128xf32> to vector<6x128xf32>
      %255 = arith.mulf %51, %254 : vector<6x128xf32>
      %256 = arith.addf %252, %255 : vector<6x128xf32>
      %257 = vector.extract_strided_slice %256 {offsets = [0, 0], sizes = [2, 128], strides = [1, 1]} : vector<6x128xf32> to vector<2x128xf32>
      %258 = vector.extract_strided_slice %256 {offsets = [2, 0], sizes = [2, 128], strides = [1, 1]} : vector<6x128xf32> to vector<2x128xf32>
      %259 = vector.extract_strided_slice %256 {offsets = [4, 0], sizes = [2, 128], strides = [1, 1]} : vector<6x128xf32> to vector<2x128xf32>
      %260 = arith.maximumf %257, %258 : vector<2x128xf32>
      %261 = arith.maximumf %260, %259 : vector<2x128xf32>
      %262 = arith.minimumf %257, %258 : vector<2x128xf32>
      %263 = arith.minimumf %262, %259 : vector<2x128xf32>
      %264 = arith.addf %257, %258 : vector<2x128xf32>
      %265 = arith.addf %264, %259 : vector<2x128xf32>
      %266 = arith.subf %265, %261 : vector<2x128xf32>
      %267 = arith.subf %266, %263 : vector<2x128xf32>
      %268 = arith.addf %261, %267 : vector<2x128xf32>
      %cst_44 = arith.constant 3.000000e+00 : f32
      %269 = vector.broadcast %cst_44 : f32 to vector<2x128xf32>
      %270 = arith.mulf %269, %263 : vector<2x128xf32>
      %271 = arith.subf %270, %265 : vector<2x128xf32>
      %cst_45 = arith.constant 1.000000e+00 : f32
      %272 = vector.broadcast %cst_45 : f32 to vector<2x128xf32>
      %273 = arith.addf %271, %272 : vector<2x128xf32>
      %cst_46 = arith.constant 0.000000e+00 : f32
      %274 = vector.broadcast %cst_46 : f32 to vector<2x128xf32>
      %275 = arith.cmpf ogt, %273, %274 : vector<2x128xf32>
      %cst_47 = arith.constant 2.000000e+00 : f32
      %276 = vector.broadcast %cst_47 : f32 to vector<2x128xf32>
      %277 = arith.mulf %276, %267 : vector<2x128xf32>
      %278 = arith.subf %277, %268 : vector<2x128xf32>
      %cst_48 = arith.constant 1.000000e+00 : f32
      %279 = vector.broadcast %cst_48 : f32 to vector<2x128xf32>
      %280 = arith.addf %278, %279 : vector<2x128xf32>
      %cst_49 = arith.constant 0.000000e+00 : f32
      %281 = vector.broadcast %cst_49 : f32 to vector<2x128xf32>
      %282 = arith.cmpf ogt, %280, %281 : vector<2x128xf32>
      %cst_50 = arith.constant 1.000000e+00 : f32
      %283 = vector.broadcast %cst_50 : f32 to vector<2x128xf32>
      %284 = arith.subf %283, %265 : vector<2x128xf32>
      %cst_51 = arith.constant 0.333333343 : f32
      %285 = vector.broadcast %cst_51 : f32 to vector<2x128xf32>
      %286 = arith.mulf %284, %285 : vector<2x128xf32>
      %cst_52 = arith.constant 1.000000e+00 : f32
      %287 = vector.broadcast %cst_52 : f32 to vector<2x128xf32>
      %288 = arith.subf %287, %268 : vector<2x128xf32>
      %cst_53 = arith.constant 5.000000e-01 : f32
      %289 = vector.broadcast %cst_53 : f32 to vector<2x128xf32>
      %290 = arith.mulf %288, %289 : vector<2x128xf32>
      %cst_54 = arith.constant 1.000000e+00 : f32
      %291 = vector.broadcast %cst_54 : f32 to vector<2x128xf32>
      %292 = arith.subf %291, %261 : vector<2x128xf32>
      %293 = arith.select %282, %290, %292 : vector<2x128xi1>, vector<2x128xf32>
      %294 = arith.select %275, %286, %293 : vector<2x128xi1>, vector<2x128xf32>
      %295 = arith.addf %257, %294 : vector<2x128xf32>
      %cst_55 = arith.constant 0.000000e+00 : f32
      %296 = vector.broadcast %cst_55 : f32 to vector<2x128xf32>
      %297 = arith.maximumf %295, %296 : vector<2x128xf32>
      %298 = arith.addf %258, %294 : vector<2x128xf32>
      %cst_56 = arith.constant 0.000000e+00 : f32
      %299 = vector.broadcast %cst_56 : f32 to vector<2x128xf32>
      %300 = arith.maximumf %298, %299 : vector<2x128xf32>
      %301 = arith.addf %259, %294 : vector<2x128xf32>
      %cst_57 = arith.constant 0.000000e+00 : f32
      %302 = vector.broadcast %cst_57 : f32 to vector<2x128xf32>
      %303 = arith.maximumf %301, %302 : vector<2x128xf32>
      %304 = vector.extract_strided_slice %297 {offsets = [0, 0], sizes = [1, 128], strides = [1, 1]} : vector<2x128xf32> to vector<1x128xf32>
      %305 = vector.broadcast %304 : vector<1x128xf32> to vector<6x128xf32>
      %306 = arith.mulf %36, %305 : vector<6x128xf32>
      %307 = arith.addf %80, %306 : vector<6x128xf32>
      %308 = vector.extract_strided_slice %297 {offsets = [1, 0], sizes = [1, 128], strides = [1, 1]} : vector<2x128xf32> to vector<1x128xf32>
      %309 = vector.broadcast %308 : vector<1x128xf32> to vector<6x128xf32>
      %310 = arith.mulf %39, %309 : vector<6x128xf32>
      %311 = arith.addf %307, %310 : vector<6x128xf32>
      %312 = vector.extract_strided_slice %300 {offsets = [0, 0], sizes = [1, 128], strides = [1, 1]} : vector<2x128xf32> to vector<1x128xf32>
      %313 = vector.broadcast %312 : vector<1x128xf32> to vector<6x128xf32>
      %314 = arith.mulf %42, %313 : vector<6x128xf32>
      %315 = arith.addf %311, %314 : vector<6x128xf32>
      %316 = vector.extract_strided_slice %300 {offsets = [1, 0], sizes = [1, 128], strides = [1, 1]} : vector<2x128xf32> to vector<1x128xf32>
      %317 = vector.broadcast %316 : vector<1x128xf32> to vector<6x128xf32>
      %318 = arith.mulf %45, %317 : vector<6x128xf32>
      %319 = arith.addf %315, %318 : vector<6x128xf32>
      %320 = vector.extract_strided_slice %303 {offsets = [0, 0], sizes = [1, 128], strides = [1, 1]} : vector<2x128xf32> to vector<1x128xf32>
      %321 = vector.broadcast %320 : vector<1x128xf32> to vector<6x128xf32>
      %322 = arith.mulf %48, %321 : vector<6x128xf32>
      %323 = arith.addf %319, %322 : vector<6x128xf32>
      %324 = vector.extract_strided_slice %303 {offsets = [1, 0], sizes = [1, 128], strides = [1, 1]} : vector<2x128xf32> to vector<1x128xf32>
      %325 = vector.broadcast %324 : vector<1x128xf32> to vector<6x128xf32>
      %326 = arith.mulf %51, %325 : vector<6x128xf32>
      %327 = arith.addf %323, %326 : vector<6x128xf32>
      %328 = vector.extract_strided_slice %327 {offsets = [0, 0], sizes = [2, 128], strides = [1, 1]} : vector<6x128xf32> to vector<2x128xf32>
      %329 = vector.extract_strided_slice %327 {offsets = [2, 0], sizes = [2, 128], strides = [1, 1]} : vector<6x128xf32> to vector<2x128xf32>
      %330 = vector.extract_strided_slice %327 {offsets = [4, 0], sizes = [2, 128], strides = [1, 1]} : vector<6x128xf32> to vector<2x128xf32>
      %331 = arith.maximumf %328, %329 : vector<2x128xf32>
      %332 = arith.maximumf %331, %330 : vector<2x128xf32>
      %333 = arith.minimumf %328, %329 : vector<2x128xf32>
      %334 = arith.minimumf %333, %330 : vector<2x128xf32>
      %335 = arith.addf %328, %329 : vector<2x128xf32>
      %336 = arith.addf %335, %330 : vector<2x128xf32>
      %337 = arith.subf %336, %332 : vector<2x128xf32>
      %338 = arith.subf %337, %334 : vector<2x128xf32>
      %339 = arith.addf %332, %338 : vector<2x128xf32>
      %cst_58 = arith.constant 3.000000e+00 : f32
      %340 = vector.broadcast %cst_58 : f32 to vector<2x128xf32>
      %341 = arith.mulf %340, %334 : vector<2x128xf32>
      %342 = arith.subf %341, %336 : vector<2x128xf32>
      %cst_59 = arith.constant 1.000000e+00 : f32
      %343 = vector.broadcast %cst_59 : f32 to vector<2x128xf32>
      %344 = arith.addf %342, %343 : vector<2x128xf32>
      %cst_60 = arith.constant 0.000000e+00 : f32
      %345 = vector.broadcast %cst_60 : f32 to vector<2x128xf32>
      %346 = arith.cmpf ogt, %344, %345 : vector<2x128xf32>
      %cst_61 = arith.constant 2.000000e+00 : f32
      %347 = vector.broadcast %cst_61 : f32 to vector<2x128xf32>
      %348 = arith.mulf %347, %338 : vector<2x128xf32>
      %349 = arith.subf %348, %339 : vector<2x128xf32>
      %cst_62 = arith.constant 1.000000e+00 : f32
      %350 = vector.broadcast %cst_62 : f32 to vector<2x128xf32>
      %351 = arith.addf %349, %350 : vector<2x128xf32>
      %cst_63 = arith.constant 0.000000e+00 : f32
      %352 = vector.broadcast %cst_63 : f32 to vector<2x128xf32>
      %353 = arith.cmpf ogt, %351, %352 : vector<2x128xf32>
      %cst_64 = arith.constant 1.000000e+00 : f32
      %354 = vector.broadcast %cst_64 : f32 to vector<2x128xf32>
      %355 = arith.subf %354, %336 : vector<2x128xf32>
      %cst_65 = arith.constant 0.333333343 : f32
      %356 = vector.broadcast %cst_65 : f32 to vector<2x128xf32>
      %357 = arith.mulf %355, %356 : vector<2x128xf32>
      %cst_66 = arith.constant 1.000000e+00 : f32
      %358 = vector.broadcast %cst_66 : f32 to vector<2x128xf32>
      %359 = arith.subf %358, %339 : vector<2x128xf32>
      %cst_67 = arith.constant 5.000000e-01 : f32
      %360 = vector.broadcast %cst_67 : f32 to vector<2x128xf32>
      %361 = arith.mulf %359, %360 : vector<2x128xf32>
      %cst_68 = arith.constant 1.000000e+00 : f32
      %362 = vector.broadcast %cst_68 : f32 to vector<2x128xf32>
      %363 = arith.subf %362, %332 : vector<2x128xf32>
      %364 = arith.select %353, %361, %363 : vector<2x128xi1>, vector<2x128xf32>
      %365 = arith.select %346, %357, %364 : vector<2x128xi1>, vector<2x128xf32>
      %366 = arith.addf %328, %365 : vector<2x128xf32>
      %cst_69 = arith.constant 0.000000e+00 : f32
      %367 = vector.broadcast %cst_69 : f32 to vector<2x128xf32>
      %368 = arith.maximumf %366, %367 : vector<2x128xf32>
      %369 = arith.addf %329, %365 : vector<2x128xf32>
      %cst_70 = arith.constant 0.000000e+00 : f32
      %370 = vector.broadcast %cst_70 : f32 to vector<2x128xf32>
      %371 = arith.maximumf %369, %370 : vector<2x128xf32>
      %372 = arith.addf %330, %365 : vector<2x128xf32>
      %cst_71 = arith.constant 0.000000e+00 : f32
      %373 = vector.broadcast %cst_71 : f32 to vector<2x128xf32>
      %374 = arith.maximumf %372, %373 : vector<2x128xf32>
      %375 = arith.subf %368, %297 : vector<2x128xf32>
      %376 = arith.mulf %375, %375 : vector<2x128xf32>
      %377 = arith.subf %371, %300 : vector<2x128xf32>
      %378 = arith.mulf %377, %377 : vector<2x128xf32>
      %379 = arith.addf %376, %378 : vector<2x128xf32>
      %380 = arith.subf %374, %303 : vector<2x128xf32>
      %381 = arith.mulf %380, %380 : vector<2x128xf32>
      %382 = arith.addf %379, %381 : vector<2x128xf32>
      %cst_72 = arith.constant dense<0.000000e+00> : vector<128xf32>
      %383 = vector.multi_reduction <add>, %382, %cst_72 [0] : vector<2x128xf32> to vector<128xf32>
      %384 = vector.shape_cast %383 : vector<128xf32> to vector<1x128xf32>
      %cst_73 = arith.constant 0.000000e+00 : f32
      %385 = vector.broadcast %cst_73 : f32 to vector<1x128xf32>
      %386 = arith.select %86, %384, %385 : vector<1x128xi1>, vector<1x128xf32>
      %c4_i32 = arith.constant 4 : i32
      %387 = arith.addi %arg10, %c4_i32 : i32
      %388 = vector.shape_cast %386 : vector<1x128xf32> to vector<1x1x128xf32>
      %cst_74 = arith.constant dense<0xFF800000> : vector<1xf32>
      %389 = vector.multi_reduction <maximumf>, %388, %cst_74 [1, 2] : vector<1x1x128xf32> to vector<1xf32>
      %390 = vector.shape_cast %389 : vector<1xf32> to vector<1x1x1xf32>
      %391 = vector.extract %390[0, 0, 0] : f32 from vector<1x1x1xf32>
      scf.yield %368, %371, %374, %387, %391 : vector<2x128xf32>, vector<2x128xf32>, vector<2x128xf32>, i32, f32
    }
    %89 = tpu.concatenate %88#0, %88#1, %88#2 in 0 : vector<2x128xf32>, vector<2x128xf32>, vector<2x128xf32> -> vector<6x128xf32>
    %c0_14 = arith.constant 0 : index
    %c0_15 = arith.constant 0 : index
    %90 = vector.load %arg6[%c0_14, %c0_15] : memref<6x128xf32, #tpu.memory_space<vmem>>, vector<6x128xf32>
    tpu.vector_store %arg6[%c0_14, %c0_15], %89 {strides = array<i32>} : memref<6x128xf32, #tpu.memory_space<vmem>>, vector<6x128xf32>,
    return
  }
  func.func @transform_0(%arg0: i32) -> (i32, i32) {
    %c0_i32 = arith.constant 0 : i32
    %c0_i32_0 = arith.constant 0 : i32
    return %c0_i32, %arg0 : i32, i32
  }
  func.func @transform_1(%arg0: i32) -> (i32, i32) {
    %c0_i32 = arith.constant 0 : i32
    %c0_i32_0 = arith.constant 0 : i32
    %c0_i32_1 = arith.constant 0 : i32
    return %c0_i32, %c0_i32_0 : i32, i32
  }
  func.func @transform_2(%arg0: i32) -> (i32, i32) {
    %c0_i32 = arith.constant 0 : i32
    %c0_i32_0 = arith.constant 0 : i32
    %c0_i32_1 = arith.constant 0 : i32
    return %c0_i32, %c0_i32_0 : i32, i32
  }
  func.func @transform_3(%arg0: i32) -> (i32, i32) {
    %c0_i32 = arith.constant 0 : i32
    %c0_i32_0 = arith.constant 0 : i32
    %c0_i32_1 = arith.constant 0 : i32
    return %c0_i32, %c0_i32_0 : i32, i32
  }
  func.func @transform_4(%arg0: i32) -> (i32, i32) {
    %c0_i32 = arith.constant 0 : i32
    %c0_i32_0 = arith.constant 0 : i32
    %c0_i32_1 = arith.constant 0 : i32
    return %c0_i32, %c0_i32_0 : i32, i32
  }
  func.func @transform_5(%arg0: i32) -> (i32, i32) {
    %c0_i32 = arith.constant 0 : i32
    %c0_i32_0 = arith.constant 0 : i32
    return %c0_i32, %arg0 : i32, i32
  }
}

</mosaic_0001>

<bundles_post_ra>
// kernel: nfpn_rps_forward.1
= control target key start
LH: loop header
LB: loop body
LE: loop exit
PB: predicated region body
PF: predicated region fallthrough
CT: control target
= control target key end

     0   :  { %v489_v0 = vmov 1   ;;  %v490_v1 = vmov 0   ;;  %v491_v6 = vmov 2   ;;  %v492_v9 = vmov 3   ;;  %s625_s1 = inlined_call_operand.vmem [shape: f32[6,3], index: 1, kind: input, shape index: {}]   ;;  %s626_s3 = inlined_call_operand.vmem [shape: f32[6,6], index: 3, kind: input, shape index: {}]   ;;  %s627_s2 = inlined_call_operand.vmem [shape: f32[6,1], index: 2, kind: input, shape index: {}]   ;;  %s628_s4 = inlined_call_operand.vmem [shape: f32[6,1], index: 4, kind: input, shape index: {}]   ;;  %s629_s5 = inlined_call_operand.vmem [shape: f32[6,128], index: 5, kind: output, shape index: {}]   ;;  %s630_s0 = inlined_call_operand.vmem [shape: f32[3,128], index: 0, kind: input, shape index: {}]  }
   0x1   :  { %449 = vset.pattern.permute.xlu1 %v489_v0  ;;  %448 = vset.pattern.permute.xlu0 %v490_v1  ;;  %v21_v2 = vld [vmem:[%s625_s1] sm:$0x3f]  ;;  %v493_v10 = vmov 4   ;;  %v494_v11 = vmov 5   ;;  %v105_v12 = vlaneseq  ;;  %v565_v55 = vmov 0.33333334  }
   0x2   :  { %39 = vperm.xlu1 %449, %v21_v2   ;;  %32 = vperm.xlu0 %448, %v21_v2   ;;  %v22_v3 = vld [vmem:[%s626_s3] sm:$0x3f]  ;;  %v567_v56 = vmov 0.33333334   ;;  %v569_v57 = vmov 0.33333334  }
   0x3   :  { %v23_v4 = vsub.f32 0.0, %v22_v3  ;;  %451 = vset.pattern.permute.xlu2 %v490_v1  ;;  %v24_v5 = vld [vmem:[%s627_s2] sm:$0x3f]  ;;  %v537_v13 = vand.u32 127, %v105_v12 }
   0x4   :  { %v80_v7 = vld [vmem:[%s628_s4] sm:$0x3f] }
   0x5   :  { %57 = vperm.xlu2 %451, %v23_v4   ;;  %v81_v8 = vsub.f32 0.0, %v80_v7  ;;  %v20_v15 = vld [vmem:[%s630_s0] sm:$0x7]  ;;  %vm110_vm0 = vcmp.lt.s32.totalorder %v537_v13, 2  ;;  %s563_s0 = smov 0  }
   0x6   :  { %v35_v17 = vperm.slane %v20_v15, 0  ;;  %v42_v19 = vperm.slane %v20_v15, 1  ;;  %v49_v20 = vperm.slane %v20_v15, 2 }
   0xa   :  { %450 = vset.pattern.permute.xlu1 %v491_v6  ;;  %27 = vperm.xlu0 %448, %v24_v5  }
   0xb   :  { %46 = vperm.xlu1 %450, %v21_v2  }
   0xd   :  { %452 = vset.pattern.permute.xlu2 %v489_v0 }
   0xe   :  { %61 = vperm.xlu2 %452, %v23_v4  }
  0x12   :  { %84 = vperm.xlu0 %448, %v81_v8  }
  0x13   :  { %65 = vperm.xlu1 %450, %v23_v4  }
  0x16   :  { %453 = vset.pattern.permute.xlu2 %v492_v9 }
  0x17   :  { %69 = vperm.xlu2 %453, %v23_v4  }
  0x1a   :  { %454 = vset.pattern.permute.xlu0 %v493_v10 }
  0x1b   :  { %455 = vset.pattern.permute.xlu1 %v494_v11  ;;  %73 = vperm.xlu0 %454, %v23_v4  }
  0x1c   :  { %77 = vperm.xlu1 %455, %v23_v4  }
  0x23   :  { %456 = vset.pattern.permute.xlu0 %v490_v1 }
  0x5f   :  { %v543_v18 = vpop.permute.xlu2 %57 }
  0x68   :  { %v545_v29 = vpop.permute.xlu2 %61 }
  0x71   :  { %v551_v41 = vpop.permute.xlu2 %69 }
  0x74   :  { %v33_v14 = vpop.permute.xlu0 %32  ;;  %v40_v16 = vpop.permute.xlu1 %39 }
  0x75   :  { %v36_v21 = vmul.f32 %v35_v17, %v33_v14  ;;  %v43_v23 = vmul.f32 %v42_v19, %v40_v16 }
  0x7c   :  { %v28_v22 = vpop.permute.xlu0 %27 }
  0x7d   :  { %v37_v24 = vadd.f32 %v36_v21, %v28_v22  ;;  %v47_v25 = vpop.permute.xlu1 %46 }
  0x7e   :  { %v50_v26 = vmul.f32 %v49_v20, %v47_v25 }
  0x7f   :  { %v44_v27 = vadd.f32 %v43_v23, %v37_v24 }
  0x81   :  { %v51_v28 = vadd.f32 %v50_v26, %v44_v27 }
  0x83   :  { %vm52_vm1 = vcmp.ge.f32.partialorder %v51_v28, 0.0  ;;  %v53_v30 = vmul.f32 0.1, %v51_v28 }
  0x84   :  { %v85_v31 = vpop.permute.xlu0 %84 }
  0x85   :  { %v54_v32 = vsel %vm52_vm1, %v51_v28, %v53_v30  ;;  %v547_v33 = vpop.permute.xlu1 %65 }
  0x86   :  { %v90_v34 = vperm.slane %v54_v32, 1  ;;  %v87_v35 = vperm.slane %v54_v32, 0  ;;  %v93_v37 = vperm.slane %v54_v32, 2  ;;  %v96_v40 = vperm.slane %v54_v32, 3 }
  0x87   :  { %v99_v47 = vperm.slane %v54_v32, 4  ;;  %v102_v51 = vperm.slane %v54_v32, 5 }
  0x88   :  { %v88_v36 = vmul.f32 %v87_v35, %v543_v18  ;;  %v91_v38 = vmul.f32 %v90_v34, %v545_v29  ;;  %v94_v43 = vmul.f32 %v93_v37, %v547_v33  ;;  %v97_v46 = vmul.f32 %v96_v40, %v551_v41 }
  0x8a   :  { %v89_v39 = vadd.f32 %v88_v36, %v85_v31 }
  0x8c   :  { %v92_v42 = vadd.f32 %v91_v38, %v89_v39 }
  0x8d   :  { %v554_v44 = vpop.permute.xlu0 %73 }
  0x8e   :  { %v95_v45 = vadd.f32 %v94_v43, %v92_v42  ;;  %v557_v48 = vpop.permute.xlu1 %77  ;;  %v100_v50 = vmul.f32 %v99_v47, %v554_v44 }
  0x8f   :  { %v103_v53 = vmul.f32 %v102_v51, %v557_v48 }
  0x90   :  { %v98_v49 = vadd.f32 %v97_v46, %v95_v45 }
  0x92   :  { %v101_v52 = vadd.f32 %v100_v50, %v98_v49 }
  0x94   :  { %v561_v54 = vadd.f32 %v103_v53, %v101_v52 }
  0x95 LB: > { %v123_v58 = vperm.slane %v487_v57, 0  ;;  %v126_v59 = vperm.slane %v487_v57, 1  ;;  %v129_v60 = vperm.slane %v483_v56, 2  ;;  %v132_v63 = vperm.slane %v483_v56, 3  ;;  %s378_s3 = sadd.s32 4, %s475_s0   ;;  %v487_v57 = vphi %v569_v57, %v634_v57   ;;  %v483_v56 = vphi %v567_v56, %v633_v56   ;;  %v479_v55 = vphi %v565_v55, %v632_v55   ;;  %s475_s0 = sphi %s563_s0, %s631_s0  }
  0x96   : > { %v135_v2 = vperm.slane %v479_v55, 4  ;;  %v138_v5 = vperm.slane %v479_v55, 5  ;;  %vm369_vm10 = vcmask 1041408   ;;  %p118_p1 = scmp.lt.s32.totalorder %s378_s3, 100  ;;  %s631_s0 = smov %s378_s3 }
  0x97   : > { %v124_v61 = vmul.f32 %v123_v58, %v543_v18  ;;  %v127_v62 = vmul.f32 %v126_v59, %v545_v29  ;;  %v130_v1 = vmul.f32 %v129_v60, %v547_v33  ;;  %v133_v4 = vmul.f32 %v132_v63, %v551_v41 }
  0x98   : > { %v136_v7 = vmul.f32 %v135_v2, %v554_v44  ;;  %v139_v9 = vmul.f32 %v138_v5, %v557_v48 }
  0x99   : > { %v125_v0 = vadd.f32 %v124_v61, %v561_v54 }
  0x9b   : > { %v128_v3 = vadd.f32 %v127_v62, %v125_v0 }
  0x9d   : > { %v131_v6 = vadd.f32 %v130_v1, %v128_v3 }
  0x9f   : > { %v134_v8 = vadd.f32 %v133_v4, %v131_v6 }
  0xa1   : > { %v137_v10 = vadd.f32 %v136_v7, %v134_v8 }
  0xa3   : > { %v140_v11 = vadd.f32 %v139_v9, %v137_v10 }
  0xa5   : > { %v142_v12 = vrot.slane %v140_v11, 2  ;;  %v145_v14 = vrot.slane %v140_v11, 4 }
  0xa7   : > { %v144_v15 = vmax.f32 %v140_v11, %v142_v12  ;;  %v148_v16 = vmin.f32 %v140_v11, %v142_v12  ;;  %v150_v17 = vadd.f32 %v142_v12, %v140_v11 }
  0xa9   : > { %v147_v19 = vmax.f32 %v144_v15, %v145_v14  ;;  %v149_v20 = vmin.f32 %v148_v16, %v145_v14  ;;  %v151_v21 = vadd.f32 %v150_v17, %v145_v14 }
  0xab   : > { %v152_v22 = vsub.f32 %v151_v21, %v147_v19  ;;  %v155_v23 = vmul.f32 3.0, %v149_v20  ;;  %v163_v28 = vsub.f32 1.0, %v151_v21  ;;  %v167_v34 = vsub.f32 1.0, %v147_v19 }
  0xad   : > { %v153_v24 = vsub.f32 %v152_v22, %v149_v20  ;;  %v156_v25 = vsub.f32 %v155_v23, %v151_v21  ;;  %v164_v36 = vmul.f32 0.33333334, %v163_v28 }
  0xaf   : > { %v154_v26 = vadd.f32 %v153_v24, %v147_v19  ;;  %v159_v27 = vmul.f32 2.0, %v153_v24  ;;  %v157_v30 = vadd.f32 1.0, %v156_v25 }
  0xb1   : > { %v160_v31 = vsub.f32 %v159_v27, %v154_v26  ;;  %v165_v32 = vsub.f32 1.0, %v154_v26  ;;  %vm158_vm2 = vcmp.gt.f32.partialorder %v157_v30, 0.0 }
  0xb3   : > { %v161_v35 = vadd.f32 1.0, %v160_v31  ;;  %v166_v37 = vmul.f32 0.5, %v165_v32 }
  0xb5   : > { %vm162_vm3 = vcmp.gt.f32.partialorder %v161_v35, 0.0 }
  0xb6   : > { %v168_v38 = vsel %vm162_vm3, %v166_v37, %v167_v34 }
  0xb7   : > { %v169_v39 = vsel %vm158_vm2, %v164_v36, %v168_v38 }
  0xb8   : > { %v170_v40 = vadd.f32 %v169_v39, %v140_v11  ;;  %v173_v42 = vrot.slane %v169_v39, 6  ;;  %v177_v43 = vrot.slane %v169_v39, 4 }
  0xba   : > { %v171_v45 = vmax.f32 %v170_v40, 0.0  ;;  %v175_v46 = vadd.f32 %v173_v42, %v140_v11  ;;  %v179_v47 = vadd.f32 %v177_v43, %v140_v11 }
  0xbc   : > { %v176_v49 = vmax.f32 %v175_v46, 0.0  ;;  %v180_v50 = vmax.f32 %v179_v47, 0.0  ;;  %v181_v51 = vperm.slane %v171_v45, 0  ;;  %v184_v52 = vperm.slane %v171_v45, 1 }
  0xbe   : > { %v182_v53 = vmul.f32 %v181_v51, %v543_v18  ;;  %v185_v55 = vmul.f32 %v184_v52, %v545_v29  ;;  %v187_v56 = vperm.slane %v176_v49, 2  ;;  %v190_v57 = vperm.slane %v176_v49, 3 }
  0xbf   : > { %v193_v60 = vperm.slane %v180_v50, 4  ;;  %v196_v63 = vperm.slane %v180_v50, 5 }
  0xc0   : > { %v183_v58 = vadd.f32 %v182_v53, %v561_v54  ;;  %v188_v59 = vmul.f32 %v187_v56, %v547_v33  ;;  %v191_v62 = vmul.f32 %v190_v57, %v551_v41 }
  0xc1   : > { %v194_v1 = vmul.f32 %v193_v60, %v554_v44  ;;  %v197_v3 = vmul.f32 %v196_v63, %v557_v48 }
  0xc2   : > { %v186_v61 = vadd.f32 %v185_v55, %v183_v58 }
  0xc4   : > { %v189_v0 = vadd.f32 %v188_v59, %v186_v61 }
  0xc6   : > { %v192_v2 = vadd.f32 %v191_v62, %v189_v0 }
  0xc8   : > { %v195_v4 = vadd.f32 %v194_v1, %v192_v2 }
  0xca   : > { %v198_v5 = vadd.f32 %v197_v3, %v195_v4 }
  0xcc   : > { %v200_v6 = vrot.slane %v198_v5, 2  ;;  %v203_v7 = vrot.slane %v198_v5, 4 }
  0xce   : > { %v202_v8 = vmax.f32 %v198_v5, %v200_v6  ;;  %v206_v9 = vmin.f32 %v198_v5, %v200_v6  ;;  %v208_v10 = vadd.f32 %v200_v6, %v198_v5 }
  0xd0   : > { %v205_v11 = vmax.f32 %v202_v8, %v203_v7  ;;  %v207_v12 = vmin.f32 %v206_v9, %v203_v7  ;;  %v209_v14 = vadd.f32 %v208_v10, %v203_v7 }
  0xd2   : > { %v210_v15 = vsub.f32 %v209_v14, %v205_v11  ;;  %v213_v16 = vmul.f32 3.0, %v207_v12  ;;  %v221_v22 = vsub.f32 1.0, %v209_v14  ;;  %v225_v26 = vsub.f32 1.0, %v205_v11 }
  0xd4   : > { %v211_v17 = vsub.f32 %v210_v15, %v207_v12  ;;  %v214_v19 = vsub.f32 %v213_v16, %v209_v14  ;;  %v222_v28 = vmul.f32 0.33333334, %v221_v22 }
  0xd6   : > { %v212_v20 = vadd.f32 %v211_v17, %v205_v11  ;;  %v217_v21 = vmul.f32 2.0, %v211_v17  ;;  %v215_v23 = vadd.f32 1.0, %v214_v19 }
  0xd8   : > { %v218_v24 = vsub.f32 %v217_v21, %v212_v20  ;;  %v223_v25 = vsub.f32 1.0, %v212_v20  ;;  %vm216_vm4 = vcmp.gt.f32.partialorder %v215_v23, 0.0 }
  0xda   : > { %v219_v27 = vadd.f32 1.0, %v218_v24  ;;  %v224_v30 = vmul.f32 0.5, %v223_v25 }
  0xdc   : > { %vm220_vm5 = vcmp.gt.f32.partialorder %v219_v27, 0.0 }
  0xdd   : > { %v226_v31 = vsel %vm220_vm5, %v224_v30, %v225_v26 }
  0xde   : > { %v227_v32 = vsel %vm216_vm4, %v222_v28, %v226_v31 }
  0xdf   : > { %v228_v34 = vadd.f32 %v227_v32, %v198_v5  ;;  %v231_v35 = vrot.slane %v227_v32, 6  ;;  %v235_v36 = vrot.slane %v227_v32, 4 }
  0xe1   : > { %v229_v37 = vmax.f32 %v228_v34, 0.0  ;;  %v233_v38 = vadd.f32 %v231_v35, %v198_v5  ;;  %v237_v39 = vadd.f32 %v235_v36, %v198_v5 }
  0xe3   : > { %v234_v40 = vmax.f32 %v233_v38, 0.0  ;;  %v238_v42 = vmax.f32 %v237_v39, 0.0  ;;  %v239_v43 = vperm.slane %v229_v37, 0  ;;  %v242_v45 = vperm.slane %v229_v37, 1 }
  0xe5   : > { %v240_v46 = vmul.f32 %v239_v43, %v543_v18  ;;  %v243_v47 = vmul.f32 %v242_v45, %v545_v29  ;;  %v245_v49 = vperm.slane %v234_v40, 2  ;;  %v248_v50 = vperm.slane %v234_v40, 3 }
  0xe6   : > { %v251_v53 = vperm.slane %v238_v42, 4  ;;  %v254_v57 = vperm.slane %v238_v42, 5 }
  0xe7   : > { %v241_v51 = vadd.f32 %v240_v46, %v561_v54  ;;  %v246_v52 = vmul.f32 %v245_v49, %v547_v33  ;;  %v249_v56 = vmul.f32 %v248_v50, %v551_v41 }
  0xe8   : > { %v252_v59 = vmul.f32 %v251_v53, %v554_v44  ;;  %v255_v61 = vmul.f32 %v254_v57, %v557_v48 }
  0xe9   : > { %v244_v55 = vadd.f32 %v243_v47, %v241_v51 }
  0xeb   : > { %v247_v58 = vadd.f32 %v246_v52, %v244_v55 }
  0xed   : > { %v250_v60 = vadd.f32 %v249_v56, %v247_v58 }
  0xef   : > { %v253_v62 = vadd.f32 %v252_v59, %v250_v60 }
  0xf1   : > { %v256_v63 = vadd.f32 %v255_v61, %v253_v62 }
  0xf3   : > { %v258_v0 = vrot.slane %v256_v63, 2  ;;  %v261_v1 = vrot.slane %v256_v63, 4 }
  0xf5   : > { %v260_v2 = vmax.f32 %v256_v63, %v258_v0  ;;  %v264_v3 = vmin.f32 %v256_v63, %v258_v0  ;;  %v266_v4 = vadd.f32 %v258_v0, %v256_v63 }
  0xf7   : > { %v263_v5 = vmax.f32 %v260_v2, %v261_v1  ;;  %v265_v6 = vmin.f32 %v264_v3, %v261_v1  ;;  %v267_v7 = vadd.f32 %v266_v4, %v261_v1 }
  0xf9   : > { %v268_v8 = vsub.f32 %v267_v7, %v263_v5  ;;  %v271_v9 = vmul.f32 3.0, %v265_v6  ;;  %v279_v15 = vsub.f32 1.0, %v267_v7  ;;  %v283_v20 = vsub.f32 1.0, %v263_v5 }
  0xfb   : > { %v269_v10 = vsub.f32 %v268_v8, %v265_v6  ;;  %v272_v11 = vsub.f32 %v271_v9, %v267_v7  ;;  %v280_v22 = vmul.f32 0.33333334, %v279_v15 }
  0xfd   : > { %v270_v12 = vadd.f32 %v269_v10, %v263_v5  ;;  %v275_v14 = vmul.f32 2.0, %v269_v10  ;;  %v273_v16 = vadd.f32 1.0, %v272_v11 }
  0xff   : > { %v276_v17 = vsub.f32 %v275_v14, %v270_v12  ;;  %v281_v19 = vsub.f32 1.0, %v270_v12  ;;  %vm274_vm6 = vcmp.gt.f32.partialorder %v273_v16, 0.0 }
 0x101   : > { %v277_v21 = vadd.f32 1.0, %v276_v17  ;;  %v282_v23 = vmul.f32 0.5, %v281_v19 }
 0x103   : > { %vm278_vm7 = vcmp.gt.f32.partialorder %v277_v21, 0.0 }
 0x104   : > { %v284_v24 = vsel %vm278_vm7, %v282_v23, %v283_v20 }
 0x105   : > { %v285_v25 = vsel %vm274_vm6, %v280_v22, %v284_v24 }
 0x106   : > { %v286_v26 = vadd.f32 %v285_v25, %v256_v63  ;;  %v289_v27 = vrot.slane %v285_v25, 6  ;;  %v293_v28 = vrot.slane %v285_v25, 4 }
 0x108   : > { %v287_v30 = vmax.f32 %v286_v26, 0.0  ;;  %v291_v31 = vadd.f32 %v289_v27, %v256_v63  ;;  %v295_v32 = vadd.f32 %v293_v28, %v256_v63 }
 0x10a   : > { %v292_v34 = vmax.f32 %v291_v31, 0.0  ;;  %v296_v35 = vmax.f32 %v295_v32, 0.0  ;;  %v297_v36 = vperm.slane %v287_v30, 0  ;;  %v300_v37 = vperm.slane %v287_v30, 1 }
 0x10c   : > { %v298_v38 = vmul.f32 %v297_v36, %v543_v18  ;;  %v301_v39 = vmul.f32 %v300_v37, %v545_v29  ;;  %v303_v40 = vperm.slane %v292_v34, 2  ;;  %v306_v42 = vperm.slane %v292_v34, 3 }
 0x10d   : > { %v309_v46 = vperm.slane %v296_v35, 4  ;;  %v312_v50 = vperm.slane %v296_v35, 5 }
 0x10e   : > { %v299_v43 = vadd.f32 %v298_v38, %v561_v54  ;;  %v304_v45 = vmul.f32 %v303_v40, %v547_v33  ;;  %v307_v49 = vmul.f32 %v306_v42, %v551_v41 }
 0x10f   : > { %v310_v52 = vmul.f32 %v309_v46, %v554_v44  ;;  %v313_v55 = vmul.f32 %v312_v50, %v557_v48 }
 0x110   : > { %v302_v47 = vadd.f32 %v301_v39, %v299_v43 }
 0x112   : > { %v305_v51 = vadd.f32 %v304_v45, %v302_v47 }
 0x114   : > { %v308_v53 = vadd.f32 %v307_v49, %v305_v51 }
 0x116   : > { %v311_v56 = vadd.f32 %v310_v52, %v308_v53 }
 0x118   : > { %v314_v57 = vadd.f32 %v313_v55, %v311_v56 }
 0x11a   : > { %v316_v58 = vrot.slane %v314_v57, 2  ;;  %v319_v59 = vrot.slane %v314_v57, 4 }
 0x11c   : > { %v318_v60 = vmax.f32 %v314_v57, %v316_v58  ;;  %v322_v61 = vmin.f32 %v314_v57, %v316_v58  ;;  %v324_v62 = vadd.f32 %v316_v58, %v314_v57 }
 0x11e   : > { %v321_v63 = vmax.f32 %v318_v60, %v319_v59  ;;  %v323_v0 = vmin.f32 %v322_v61, %v319_v59  ;;  %v325_v1 = vadd.f32 %v324_v62, %v319_v59 }
 0x120   : > { %v326_v2 = vsub.f32 %v325_v1, %v321_v63  ;;  %v329_v3 = vmul.f32 3.0, %v323_v0  ;;  %v337_v8 = vsub.f32 1.0, %v325_v1  ;;  %v341_v12 = vsub.f32 1.0, %v321_v63 }
 0x122   : > { %v327_v4 = vsub.f32 %v326_v2, %v323_v0  ;;  %v330_v5 = vsub.f32 %v329_v3, %v325_v1  ;;  %v338_v15 = vmul.f32 0.33333334, %v337_v8 }
 0x124   : > { %v328_v6 = vadd.f32 %v327_v4, %v321_v63  ;;  %v333_v7 = vmul.f32 2.0, %v327_v4  ;;  %v331_v9 = vadd.f32 1.0, %v330_v5 }
 0x126   : > { %v334_v10 = vsub.f32 %v333_v7, %v328_v6  ;;  %v339_v11 = vsub.f32 1.0, %v328_v6  ;;  %vm332_vm8 = vcmp.gt.f32.partialorder %v331_v9, 0.0 }
 0x128   : > { %v335_v14 = vadd.f32 1.0, %v334_v10  ;;  %v340_v16 = vmul.f32 0.5, %v339_v11 }
 0x12a   : > { %vm336_vm9 = vcmp.gt.f32.partialorder %v335_v14, 0.0 }
 0x12b   : > { %v342_v17 = vsel %vm336_vm9, %v340_v16, %v341_v12 }
 0x12c   : > { %v343_v19 = vsel %vm332_vm8, %v338_v15, %v342_v17 }
 0x12d   : > { %v344_v20 = vadd.f32 %v343_v19, %v314_v57  ;;  %v347_v21 = vrot.slane %v343_v19, 6  ;;  %v351_v22 = vrot.slane %v343_v19, 4 }
 0x12f   : > { %v345_v23 = vmax.f32 %v344_v20, 0.0   ;;  %v349_v24 = vadd.f32 %v347_v21, %v314_v57  ;;  %v353_v25 = vadd.f32 %v351_v22, %v314_v57 }
 0x131   : > { %v350_v26 = vmax.f32 %v349_v24, 0.0   ;;  %v354_v27 = vmax.f32 %v353_v25, 0.0   ;;  %v355_v28 = vsub.f32 %v345_v23, %v287_v30  ;;  %v634_v57 = vmov %v345_v23 }
 0x133   : > { %v357_v31 = vsub.f32 %v350_v26, %v292_v34  ;;  %v363_v32 = vsub.f32 %v354_v27, %v296_v35  ;;  %v356_v36 = vmul.f32 %v355_v28, %v355_v28  ;;  %v632_v55 = vmov %v354_v27 }
 0x134   : > { %v633_v56 = vmov %v350_v26 }
 0x135   : > { %v358_v37 = vmul.f32 %v357_v31, %v357_v31  ;;  %v364_v38 = vmul.f32 %v363_v32, %v363_v32 }
 0x137   : > { %v360_v39 = vrot.slane %v358_v37, 2  ;;  %v366_v40 = vrot.slane %v364_v38, 4 }
 0x139   : > { %v362_v42 = vadd.f32 %v360_v39, %v356_v36 }
 0x13b   : > { %v368_v43 = vadd.f32 %v366_v40, %v362_v42 }
 0x13d   : > { %v370_v45 = vsel %vm369_vm10, %v368_v43, 0.0 }
 0x13e   : > { %v371_v46 = vrot.slane %v370_v45, 4 }
 0x140   : > { %v372_v47 = vadd.f32 %v371_v46, %v370_v45 }
 0x142   : > { %v373_v49 = vrot.slane %v372_v47, 2 }
 0x144   : > { %v374_v50 = vadd.f32 %v373_v49, %v372_v47 }
 0x146   : > { %v375_v51 = vrot.slane %v374_v50, 1 }
 0x148   : > { %v376_v52 = vadd.f32 %v375_v51, %v374_v50 }
 0x14a   : > { %v377_v30 = vsel %vm110_vm0, %v376_v52, 0.0 }
 0x14b   : > { %379 = vmax.xlane.f32.xlu0 %v377_v30 }
 0x1be   : > { %v380_v34 = vpop.xlane.xlu0 %379 }
 0x1bf   : > { %408 = vpush %v380_v34 }
 0x1f0   : > { %s409_s4 = spop %408 }
 0x1f1   : > { %p117_p0 = scmp.gt.f32.partialorder %s409_s4, 1e-10 }
 0x1f3   : > { %p119_p2 = pnand %p118_p1, %p117_p0 }
 0x1f4   :  { %v383_v35 = vsel (%p119_p2), %vm369_vm10, %v345_v23, %v350_v26  ;;  %vm384_vm11 = vcmask (%p119_p2), 1043456  }
 0x1f5   :  { %122 = sbr.rel (!%p119_p2) target bundleno = 149 (0x95), region = 47  ;;  %v385_v53 = vsel (%p119_p2), %vm384_vm11, %v383_v35, %v354_v27 }
 0x1f6   :  { %386 = vst [vmem:[%s629_s5] sm:$0x3f] (%p119_p2), %v385_v53 }

</bundles_post_ra>
